<compile_context>
chip_gen: v5e
topology: v5e:2x2
jax: 0.10.0
libtpu: 0.0.40
codegen_flags: <defaults>
</compile_context>

<pallas_src>
import functools

import jax
import jax.numpy as jnp
from jax import lax
from jax.experimental import pallas as pl
from jax.experimental.pallas import tpu as pltpu

_NEG_BIG = -1e30  # finite "minus infinity" for masked logits (exp -> 0)


def _contrastive_loss_kernel(xq_ref, xkt_ref, ycol_ref, yrow_ref, loss_ref,
                             m_acc, t_acc, p_acc, *,
                             inv_scale: float, tm: int, tn: int,
                             n_valid: int, num_k: int, has_col_pad: bool):
    i = pl.program_id(0)          # row block (parallel)
    k = pl.program_id(1)          # key block (last axis, arbitrary)

    @pl.when(k == 0)
    def _init():
        m_acc[...] = jnp.full_like(m_acc, _NEG_BIG)
        t_acc[...] = jnp.zeros_like(t_acc)
        p_acc[...] = jnp.zeros_like(p_acc)

    # bf16 MXU inputs, f32 accumulation.  Scale folded into the (TM,D) query
    # operand (bilinear) instead of a full (TM,TN) slab multiply.
    q = (xq_ref[...] * inv_scale).astype(jnp.bfloat16)         # (TM, D)
    kt = xkt_ref[...].astype(jnp.bfloat16)                      # (D, TN)
    sim = lax.dot_general(q, kt, (((1,), (0,)), ((), ())),
                          preferred_element_type=jnp.float32)   # (TM, TN) f32

    pos_sel = ycol_ref[...] == yrow_ref[...]                    # (TM,1)==(1,TN)

    def online_update(logits):
        m_prev = m_acc[...]
        m_new = jnp.maximum(m_prev, jnp.max(logits, axis=1, keepdims=True))
        alpha = jnp.exp(m_prev - m_new)
        e = jnp.exp(logits - m_new)                  # masked entries -> 0
        t_acc[...] = alpha * t_acc[...] + jnp.sum(e, axis=1, keepdims=True)
        p_acc[...] = alpha * p_acc[...] + jnp.sum(
            jnp.where(pos_sel, e, 0.0), axis=1, keepdims=True)
        m_acc[...] = m_new

    # Only the key tile(s) overlapping this row block's diagonal (and, if the
    # key axis is padded, the statically-known last tile) pay for the
    # iota / compare / select mask.
    diag_overlap = jnp.logical_and(k * tn < (i + 1) * tm,
                                   (k + 1) * tn > i * tm)
    needs_mask = diag_overlap
    if has_col_pad:
        needs_mask = jnp.logical_or(needs_mask, k == num_k - 1)

    @pl.when(needs_mask)
    def _masked():
        rows = i * tm + lax.broadcasted_iota(jnp.int32, (tm, tn), 0)
        cols = k * tn + lax.broadcasted_iota(jnp.int32, (tm, tn), 1)
        bad = rows == cols                             # self-similarity
        if has_col_pad:
            bad = jnp.logical_or(bad, cols >= n_valid)  # padded key columns
        online_update(jnp.where(bad, _NEG_BIG, sim))

    @pl.when(jnp.logical_not(needs_mask))
    def _plain():
        online_update(sim)

    @pl.when(k == num_k - 1)
    def _finalize():
        m = m_acc[...]
        pos = p_acc[...]
        # The reference adds 1e-8 to the *unscaled* denominator; in row-max
        # scaled units that is 1e-8 * exp(-m), so the epsilon placement is
        # identical to the PyTorch module.
        denom = t_acc[...] + jnp.float32(1e-8) * jnp.exp(-m)
        # -log(pos / denom) as an exact log difference (no approx reciprocal).
        loss_ref[...] = jnp.log(denom) - jnp.log(pos)


def _round_up(a: int, b: int) -> int:
    return (a + b - 1) // b * b


def _tile_sizes(n: int, d: int):
    """Pick (TM, TN) under a conservative (all-generation-safe) VMEM budget."""
    tm = min(256, _round_up(n, 8))
    # Small n: a single full-width key tile (block dim == full dim is legal
    # even when not a multiple of 128).  Large n: 512-wide key tiles.
    tn = _round_up(n, 8) if n <= 512 else 512

    def est(tm_, tn_):
        b = 0
        b += 2 * tm_ * d * 4             # query block (double buffered)
        b += 2 * d * tn_ * 4             # key block (double buffered)
        b += 4 * tm_ * tn_ * 4           # live (TM,TN) f32 slab temporaries
        b += tm_ * d * 2 + d * tn_ * 2   # bf16 casts of the dot operands
        b += 16 * tm_ * 4                # labels / scratch / output (approx)
        return b

    budget = 32 * 1024 * 1024
    while est(tm, tn) > budget and (tm > 8 or tn > 128):
        if n > 512 and tn > 128:
            tn //= 2                     # stays a multiple of 128
        elif tm > 8:
            tm = max(8, tm // 2)         # stays a multiple of 8
        else:
            break
    return tm, tn


def contrastive_loss(x: jax.Array, y: jax.Array,
                     temperature: float = 0.07) -> jax.Array:
    """Pallas implementation of ContrastiveLoss.forward(x, y)."""
    n, d = x.shape
    inv_scale = 16.0 / (float(n) * float(n) * float(temperature))

    tm, tn = _tile_sizes(n, d)
    n_pad_rows = _round_up(n, tm)
    n_pad_cols = _round_up(n, tn)
    grid = (n_pad_rows // tm, n_pad_cols // tn)
    num_k = grid[1]
    has_col_pad = n_pad_cols != n

    x32 = x.astype(jnp.float32)
    y_i32 = y.reshape(-1).astype(jnp.int32)

    # Queries: (n_pad_rows, D).  Keys pre-transposed to (D, n_pad_cols) so the
    # in-kernel dot is a plain NN matmul (no hidden RHS transpose in-kernel).
    xq = jnp.pad(x32, ((0, n_pad_rows - n), (0, 0)))
    xkt = jnp.pad(x32.T, ((0, 0), (0, n_pad_cols - n)))
    # Padded labels use distinct sentinels so they never match anything.
    y_col = jnp.pad(y_i32, (0, n_pad_rows - n),
                    constant_values=-1).reshape(n_pad_rows, 1)
    y_row = jnp.pad(y_i32, (0, n_pad_cols - n),
                    constant_values=-2).reshape(1, n_pad_cols)

    kernel = functools.partial(
        _contrastive_loss_kernel, inv_scale=inv_scale, tm=tm, tn=tn,
        n_valid=n, num_k=num_k, has_col_pad=has_col_pad)

    # Scoped VMEM budget: generous on v5e/v6e (128 MiB physical), capped to
    # stay safely under v7x's 64 MiB physical VMEM.
    try:
        cap = int(pltpu.get_tpu_info().vmem_capacity_bytes)
        vmem_limit = max(32 * 1024 * 1024,
                         min(cap - 16 * 1024 * 1024, 100 * 1024 * 1024))
    except Exception:
        vmem_limit = 48 * 1024 * 1024

    cost = pl.CostEstimate(
        flops=2 * grid[0] * tm * n_pad_cols * d,
        transcendentals=grid[0] * tm * n_pad_cols,
        bytes_accessed=4 * (grid[0] * n_pad_cols * d + n_pad_rows * d
                            + 2 * n_pad_rows + n_pad_cols),
    )

    loss_rows = pl.pallas_call(
        kernel,
        out_shape=jax.ShapeDtypeStruct((n_pad_rows, 1), jnp.float32),
        grid=grid,
        in_specs=[
            pl.BlockSpec((tm, d), lambda i, k: (i, 0)),    # query row block
            pl.BlockSpec((d, tn), lambda i, k: (0, k)),    # key tile (D, TN)
            pl.BlockSpec((tm, 1), lambda i, k: (i, 0)),    # labels (column)
            pl.BlockSpec((1, tn), lambda i, k: (0, k)),    # labels (row tile)
        ],
        out_specs=pl.BlockSpec((tm, 1), lambda i, k: (i, 0)),
        scratch_shapes=[
            pltpu.VMEM((tm, 1), jnp.float32),   # running row max
            pltpu.VMEM((tm, 1), jnp.float32),   # running total sum
            pltpu.VMEM((tm, 1), jnp.float32),   # running positive sum
        ],
        compiler_params=pltpu.CompilerParams(
            dimension_semantics=("parallel", "arbitrary"),
            vmem_limit_bytes=vmem_limit),
        cost_estimate=cost,
    )(xq, xkt, y_col, y_row)

    # Final mean of the valid per-row losses (tiny) in the wrapper.
    return jnp.mean(loss_rows[:n, 0])


def _reference_loss(x, y, temperature=0.07):
    """Pure-JAX reference mirroring the PyTorch module exactly."""
    n = x.shape[0]
    sim = (x @ x.T) / (n * n / 16.0)
    sim = jnp.exp(sim / temperature)
    mask_self = 1.0 - jnp.eye(n, dtype=jnp.float32)
    sim = sim * mask_self
    labels = y.reshape(-1, 1)
    mask_pos = (labels == labels.T).astype(jnp.float32)
    pos_sum = (sim * mask_pos).sum(axis=1)
    neg_sum = (sim * (1.0 - mask_pos)).sum(axis=1)
    return -jnp.log(pos_sum / (pos_sum + neg_sum + 1e-8)).mean()


if __name__ == "__main__":
    key = jax.random.PRNGKey(0)
    k1, k2 = jax.random.split(key)

    # --- Case 1: small batch (single-tile path), shapes typical of the module.
    N1, D1 = 8, 32
    x1 = jax.random.normal(k1, (N1, D1), dtype=jnp.float32)
    x1 = x1 / jnp.linalg.norm(x1, axis=1, keepdims=True)   # normalized embeddings
    y1 = jnp.array([0, 0, 1, 1, 2, 2, 3, 3], dtype=jnp.int32)  # each label paired

    loss1 = jax.block_until_ready(contrastive_loss(x1, y1, temperature=0.07))
    ref1 = _reference_loss(x1, y1, temperature=0.07)
    assert jnp.isfinite(loss1), loss1
    # bf16 MXU operands -> compare at 2e-2 (documented precision trade-off).
    assert jnp.allclose(loss1, ref1, rtol=2e-2, atol=2e-2), (loss1, ref1)

    # --- Case 2: larger batch exercising the tiled / online-accumulation /
    #     padded-key-tile path (TM=256, TN=512, grid=(3, 2)).
    N2, D2 = 600, 64
    x2 = jax.random.normal(k2, (N2, D2), dtype=jnp.float32)
    x2 = x2 / jnp.linalg.norm(x2, axis=1, keepdims=True)
    y2 = jnp.tile(jnp.arange(N2 // 2, dtype=jnp.int32), 2)  # each label appears twice

    loss2 = jax.block_until_ready(contrastive_loss(x2, y2, temperature=0.07))
    ref2 = _reference_loss(x2, y2, temperature=0.07)
    assert jnp.isfinite(loss2), loss2
    assert jnp.allclose(loss2, ref2, rtol=2e-2, atol=2e-2), (loss2, ref2)

    print("KERNEL_OK")
</pallas_src>

<mosaic_0001>
module attributes {stable_mosaic.version = 11 : i64} {
  func.func @_contrastive_loss_kernel(%arg0: i32, %arg1: i32, %arg2: memref<8x32xf32, #tpu.memory_space<vmem>>, %arg3: memref<32x8xf32, #tpu.memory_space<vmem>>, %arg4: memref<8x1xi32, #tpu.memory_space<vmem>>, %arg5: memref<1x8xi32, #tpu.memory_space<vmem>>, %arg6: memref<8x1xf32, #tpu.memory_space<vmem>>, %arg7: memref<8x1xf32, #tpu.memory_space<vmem>>, %arg8: memref<8x1xf32, #tpu.memory_space<vmem>>, %arg9: memref<8x1xf32, #tpu.memory_space<vmem>>) attributes {dimension_semantics = [#tpu.dimension_semantics<parallel>, #tpu.dimension_semantics<arbitrary>], iteration_bounds = array<i64: 1, 1>, scalar_prefetch = 0 : i64, scratch_operands = 3 : i64, tpu.core_type = #tpu.core_type<tc>, window_params = [{transform_indices = @transform_0, window_bounds = array<i64: 8, 32>}, {transform_indices = @transform_1, window_bounds = array<i64: 32, 8>}, {transform_indices = @transform_2, window_bounds = array<i64: 8, 1>}, {transform_indices = @transform_3, window_bounds = array<i64: 1, 8>}, {transform_indices = @transform_4, window_bounds = array<i64: 8, 1>}]} {
    %c0_i32 = arith.constant 0 : i32
    %0 = arith.cmpi eq, %arg1, %c0_i32 : i32
    %1 = arith.extui %0 : i1 to i32
    %c0_i32_0 = arith.constant 0 : i32
    %2 = arith.cmpi ne, %1, %c0_i32_0 : i32
    scf.if %2 {
      %cst_17 = arith.constant -1.000000e+30 : f32
      %32 = vector.broadcast %cst_17 : f32 to vector<8x1xf32>
      %c0_18 = arith.constant 0 : index
      %c0_19 = arith.constant 0 : index
      %33 = vector.load %arg7[%c0_18, %c0_19] : memref<8x1xf32, #tpu.memory_space<vmem>>, vector<8x1xf32>
      tpu.vector_store %arg7[%c0_18, %c0_19], %32 {strides = array<i32>} : memref<8x1xf32, #tpu.memory_space<vmem>>, vector<8x1xf32>,
      %cst_20 = arith.constant 0.000000e+00 : f32
      %34 = vector.broadcast %cst_20 : f32 to vector<8x1xf32>
      %c0_21 = arith.constant 0 : index
      %c0_22 = arith.constant 0 : index
      %35 = vector.load %arg8[%c0_21, %c0_22] : memref<8x1xf32, #tpu.memory_space<vmem>>, vector<8x1xf32>
      tpu.vector_store %arg8[%c0_21, %c0_22], %34 {strides = array<i32>} : memref<8x1xf32, #tpu.memory_space<vmem>>, vector<8x1xf32>,
      %cst_23 = arith.constant 0.000000e+00 : f32
      %36 = vector.broadcast %cst_23 : f32 to vector<8x1xf32>
      %c0_24 = arith.constant 0 : index
      %c0_25 = arith.constant 0 : index
      %37 = vector.load %arg9[%c0_24, %c0_25] : memref<8x1xf32, #tpu.memory_space<vmem>>, vector<8x1xf32>
      tpu.vector_store %arg9[%c0_24, %c0_25], %36 {strides = array<i32>} : memref<8x1xf32, #tpu.memory_space<vmem>>, vector<8x1xf32>,
    } else {
    }
    %c0 = arith.constant 0 : index
    %c0_1 = arith.constant 0 : index
    %3 = vector.load %arg2[%c0, %c0_1] : memref<8x32xf32, #tpu.memory_space<vmem>>, vector<8x32xf32>
    %cst = arith.constant 3.57142854 : f32
    %4 = vector.broadcast %cst : f32 to vector<8x32xf32>
    %5 = arith.mulf %3, %4 : vector<8x32xf32>
    %6 = arith.truncf %5 : vector<8x32xf32> to vector<8x32xbf16>
    %c0_2 = arith.constant 0 : index
    %c0_3 = arith.constant 0 : index
    %7 = vector.load %arg3[%c0_2, %c0_3] : memref<32x8xf32, #tpu.memory_space<vmem>>, vector<32x8xf32>
    %8 = arith.truncf %7 : vector<32x8xf32> to vector<32x8xbf16>
    %cst_4 = arith.constant dense<0.000000e+00> : vector<8x8xf32>
    %9 = tpu.matmul %6, %8, %cst_4 {dimension_numbers = #tpu.dot_dimension_numbers<[1], [0], [0], [1], [0, 0, 1, 1], [], []>} : vector<8x32xbf16>, vector<32x8xbf16>, vector<8x8xf32> -> vector<8x8xf32>
    %c0_5 = arith.constant 0 : index
    %c0_6 = arith.constant 0 : index
    %10 = vector.load %arg4[%c0_5, %c0_6] : memref<8x1xi32, #tpu.memory_space<vmem>>, vector<8x1xi32>
    %c0_7 = arith.constant 0 : index
    %c0_8 = arith.constant 0 : index
    %11 = vector.load %arg5[%c0_7, %c0_8] : memref<1x8xi32, #tpu.memory_space<vmem>>, vector<1x8xi32>
    %12 = vector.broadcast %10 : vector<8x1xi32> to vector<8x8xi32>
    %13 = vector.broadcast %11 : vector<1x8xi32> to vector<8x8xi32>
    %14 = arith.cmpi eq, %12, %13 : vector<8x8xi32>
    %c8_i32 = arith.constant 8 : i32
    %15 = arith.muli %arg1, %c8_i32 : i32
    %c1_i32 = arith.constant 1 : i32
    %16 = arith.addi %arg0, %c1_i32 : i32
    %c8_i32_9 = arith.constant 8 : i32
    %17 = arith.muli %16, %c8_i32_9 : i32
    %18 = arith.cmpi slt, %15, %17 : i32
    %c1_i32_10 = arith.constant 1 : i32
    %19 = arith.addi %arg1, %c1_i32_10 : i32
    %c8_i32_11 = arith.constant 8 : i32
    %20 = arith.muli %19, %c8_i32_11 : i32
    %c8_i32_12 = arith.constant 8 : i32
    %21 = arith.muli %arg0, %c8_i32_12 : i32
    %22 = arith.cmpi sgt, %20, %21 : i32
    %23 = arith.andi %18, %22 : i1
    %24 = arith.extui %23 : i1 to i32
    %c0_i32_13 = arith.constant 0 : i32
    %25 = arith.cmpi ne, %24, %c0_i32_13 : i32
    scf.if %25 {
      %c8_i32_17 = arith.constant 8 : i32
      %32 = arith.muli %arg0, %c8_i32_17 : i32
      %33 = tpu.iota {dimensions = array<i32: 0>} : vector<8x8xi32>
      %34 = vector.broadcast %32 : i32 to vector<8x8xi32>
      %35 = arith.addi %34, %33 : vector<8x8xi32>
      %c8_i32_18 = arith.constant 8 : i32
      %36 = arith.muli %arg1, %c8_i32_18 : i32
      %37 = tpu.iota {dimensions = array<i32: 1>} : vector<8x8xi32>
      %38 = vector.broadcast %36 : i32 to vector<8x8xi32>
      %39 = arith.addi %38, %37 : vector<8x8xi32>
      %40 = arith.cmpi eq, %35, %39 : vector<8x8xi32>
      %cst_19 = arith.constant -1.000000e+30 : f32
      %41 = vector.broadcast %cst_19 : f32 to vector<8x8xf32>
      %42 = arith.select %40, %41, %9 : vector<8x8xi1>, vector<8x8xf32>
      %c0_20 = arith.constant 0 : index
      %c0_21 = arith.constant 0 : index
      %43 = vector.load %arg7[%c0_20, %c0_21] : memref<8x1xf32, #tpu.memory_space<vmem>>, vector<8x1xf32>
      %cst_22 = arith.constant dense<0xFF800000> : vector<8xf32>
      %44 = vector.multi_reduction <maximumf>, %42, %cst_22 [1] : vector<8x8xf32> to vector<8xf32>
      %45 = vector.shape_cast %44 : vector<8xf32> to vector<8x1xf32>
      %46 = arith.maximumf %43, %45 : vector<8x1xf32>
      %47 = arith.subf %43, %46 : vector<8x1xf32>
      %48 = math.exp %47 : vector<8x1xf32>
      %49 = vector.broadcast %46 : vector<8x1xf32> to vector<8x8xf32>
      %50 = arith.subf %42, %49 : vector<8x8xf32>
      %51 = math.exp %50 : vector<8x8xf32>
      %c0_23 = arith.constant 0 : index
      %c0_24 = arith.constant 0 : index
      %52 = vector.load %arg8[%c0_23, %c0_24] : memref<8x1xf32, #tpu.memory_space<vmem>>, vector<8x1xf32>
      %53 = arith.mulf %48, %52 : vector<8x1xf32>
      %cst_25 = arith.constant dense<0.000000e+00> : vector<8xf32>
      %54 = vector.multi_reduction <add>, %51, %cst_25 [1] : vector<8x8xf32> to vector<8xf32>
      %55 = vector.shape_cast %54 : vector<8xf32> to vector<8x1xf32>
      %56 = arith.addf %53, %55 : vector<8x1xf32>
      %c0_26 = arith.constant 0 : index
      %c0_27 = arith.constant 0 : index
      %57 = vector.load %arg8[%c0_26, %c0_27] : memref<8x1xf32, #tpu.memory_space<vmem>>, vector<8x1xf32>
      tpu.vector_store %arg8[%c0_26, %c0_27], %56 {strides = array<i32>} : memref<8x1xf32, #tpu.memory_space<vmem>>, vector<8x1xf32>,
      %c0_28 = arith.constant 0 : index
      %c0_29 = arith.constant 0 : index
      %58 = vector.load %arg9[%c0_28, %c0_29] : memref<8x1xf32, #tpu.memory_space<vmem>>, vector<8x1xf32>
      %59 = arith.mulf %48, %58 : vector<8x1xf32>
      %cst_30 = arith.constant 0.000000e+00 : f32
      %60 = vector.broadcast %cst_30 : f32 to vector<8x8xf32>
      %61 = arith.select %14, %51, %60 : vector<8x8xi1>, vector<8x8xf32>
      %cst_31 = arith.constant dense<0.000000e+00> : vector<8xf32>
      %62 = vector.multi_reduction <add>, %61, %cst_31 [1] : vector<8x8xf32> to vector<8xf32>
      %63 = vector.shape_cast %62 : vector<8xf32> to vector<8x1xf32>
      %64 = arith.addf %59, %63 : vector<8x1xf32>
      %c0_32 = arith.constant 0 : index
      %c0_33 = arith.constant 0 : index
      %65 = vector.load %arg9[%c0_32, %c0_33] : memref<8x1xf32, #tpu.memory_space<vmem>>, vector<8x1xf32>
      tpu.vector_store %arg9[%c0_32, %c0_33], %64 {strides = array<i32>} : memref<8x1xf32, #tpu.memory_space<vmem>>, vector<8x1xf32>,
      %c0_34 = arith.constant 0 : index
      %c0_35 = arith.constant 0 : index
      %66 = vector.load %arg7[%c0_34, %c0_35] : memref<8x1xf32, #tpu.memory_space<vmem>>, vector<8x1xf32>
      tpu.vector_store %arg7[%c0_34, %c0_35], %46 {strides = array<i32>} : memref<8x1xf32, #tpu.memory_space<vmem>>, vector<8x1xf32>,
    } else {
    }
    %true = arith.constant true
    %26 = arith.xori %23, %true : i1
    %27 = arith.extui %26 : i1 to i32
    %c0_i32_14 = arith.constant 0 : i32
    %28 = arith.cmpi ne, %27, %c0_i32_14 : i32
    scf.if %28 {
      %c0_17 = arith.constant 0 : index
      %c0_18 = arith.constant 0 : index
      %32 = vector.load %arg7[%c0_17, %c0_18] : memref<8x1xf32, #tpu.memory_space<vmem>>, vector<8x1xf32>
      %cst_19 = arith.constant dense<0xFF800000> : vector<8xf32>
      %33 = vector.multi_reduction <maximumf>, %9, %cst_19 [1] : vector<8x8xf32> to vector<8xf32>
      %34 = vector.shape_cast %33 : vector<8xf32> to vector<8x1xf32>
      %35 = arith.maximumf %32, %34 : vector<8x1xf32>
      %36 = arith.subf %32, %35 : vector<8x1xf32>
      %37 = math.exp %36 : vector<8x1xf32>
      %38 = vector.broadcast %35 : vector<8x1xf32> to vector<8x8xf32>
      %39 = arith.subf %9, %38 : vector<8x8xf32>
      %40 = math.exp %39 : vector<8x8xf32>
      %c0_20 = arith.constant 0 : index
      %c0_21 = arith.constant 0 : index
      %41 = vector.load %arg8[%c0_20, %c0_21] : memref<8x1xf32, #tpu.memory_space<vmem>>, vector<8x1xf32>
      %42 = arith.mulf %37, %41 : vector<8x1xf32>
      %cst_22 = arith.constant dense<0.000000e+00> : vector<8xf32>
      %43 = vector.multi_reduction <add>, %40, %cst_22 [1] : vector<8x8xf32> to vector<8xf32>
      %44 = vector.shape_cast %43 : vector<8xf32> to vector<8x1xf32>
      %45 = arith.addf %42, %44 : vector<8x1xf32>
      %c0_23 = arith.constant 0 : index
      %c0_24 = arith.constant 0 : index
      %46 = vector.load %arg8[%c0_23, %c0_24] : memref<8x1xf32, #tpu.memory_space<vmem>>, vector<8x1xf32>
      tpu.vector_store %arg8[%c0_23, %c0_24], %45 {strides = array<i32>} : memref<8x1xf32, #tpu.memory_space<vmem>>, vector<8x1xf32>,
      %c0_25 = arith.constant 0 : index
      %c0_26 = arith.constant 0 : index
      %47 = vector.load %arg9[%c0_25, %c0_26] : memref<8x1xf32, #tpu.memory_space<vmem>>, vector<8x1xf32>
      %48 = arith.mulf %37, %47 : vector<8x1xf32>
      %cst_27 = arith.constant 0.000000e+00 : f32
      %49 = vector.broadcast %cst_27 : f32 to vector<8x8xf32>
      %50 = arith.select %14, %40, %49 : vector<8x8xi1>, vector<8x8xf32>
      %cst_28 = arith.constant dense<0.000000e+00> : vector<8xf32>
      %51 = vector.multi_reduction <add>, %50, %cst_28 [1] : vector<8x8xf32> to vector<8xf32>
      %52 = vector.shape_cast %51 : vector<8xf32> to vector<8x1xf32>
      %53 = arith.addf %48, %52 : vector<8x1xf32>
      %c0_29 = arith.constant 0 : index
      %c0_30 = arith.constant 0 : index
      %54 = vector.load %arg9[%c0_29, %c0_30] : memref<8x1xf32, #tpu.memory_space<vmem>>, vector<8x1xf32>
      tpu.vector_store %arg9[%c0_29, %c0_30], %53 {strides = array<i32>} : memref<8x1xf32, #tpu.memory_space<vmem>>, vector<8x1xf32>,
      %c0_31 = arith.constant 0 : index
      %c0_32 = arith.constant 0 : index
      %55 = vector.load %arg7[%c0_31, %c0_32] : memref<8x1xf32, #tpu.memory_space<vmem>>, vector<8x1xf32>
      tpu.vector_store %arg7[%c0_31, %c0_32], %35 {strides = array<i32>} : memref<8x1xf32, #tpu.memory_space<vmem>>, vector<8x1xf32>,
    } else {
    }
    %c0_i32_15 = arith.constant 0 : i32
    %29 = arith.cmpi eq, %arg1, %c0_i32_15 : i32
    %30 = arith.extui %29 : i1 to i32
    %c0_i32_16 = arith.constant 0 : i32
    %31 = arith.cmpi ne, %30, %c0_i32_16 : i32
    scf.if %31 {
      %c0_17 = arith.constant 0 : index
      %c0_18 = arith.constant 0 : index
      %32 = vector.load %arg7[%c0_17, %c0_18] : memref<8x1xf32, #tpu.memory_space<vmem>>, vector<8x1xf32>
      %c0_19 = arith.constant 0 : index
      %c0_20 = arith.constant 0 : index
      %33 = vector.load %arg9[%c0_19, %c0_20] : memref<8x1xf32, #tpu.memory_space<vmem>>, vector<8x1xf32>
      %c0_21 = arith.constant 0 : index
      %c0_22 = arith.constant 0 : index
      %34 = vector.load %arg8[%c0_21, %c0_22] : memref<8x1xf32, #tpu.memory_space<vmem>>, vector<8x1xf32>
      %cst_23 = arith.constant 0.000000e+00 : f32
      %35 = vector.broadcast %cst_23 : f32 to vector<8x1xf32>
      %36 = arith.subf %35, %32 : vector<8x1xf32>
      %37 = math.exp %36 : vector<8x1xf32>
      %cst_24 = arith.constant 9.99999993E-9 : f32
      %38 = vector.broadcast %cst_24 : f32 to vector<8x1xf32>
      %39 = arith.mulf %38, %37 : vector<8x1xf32>
      %40 = arith.addf %34, %39 : vector<8x1xf32>
      %41 = math.log %40 : vector<8x1xf32>
      %42 = math.log %33 : vector<8x1xf32>
      %43 = arith.subf %41, %42 : vector<8x1xf32>
      %c0_25 = arith.constant 0 : index
      %c0_26 = arith.constant 0 : index
      %44 = vector.load %arg6[%c0_25, %c0_26] : memref<8x1xf32, #tpu.memory_space<vmem>>, vector<8x1xf32>
      tpu.vector_store %arg6[%c0_25, %c0_26], %43 {strides = array<i32>} : memref<8x1xf32, #tpu.memory_space<vmem>>, vector<8x1xf32>,
    } else {
    }
    return
  }
  func.func @transform_0(%arg0: i32, %arg1: i32) -> (i32, i32) {
    %c0_i32 = arith.constant 0 : i32
    %c0_i32_0 = arith.constant 0 : i32
    return %arg0, %c0_i32 : i32, i32
  }
  func.func @transform_1(%arg0: i32, %arg1: i32) -> (i32, i32) {
    %c0_i32 = arith.constant 0 : i32
    %c0_i32_0 = arith.constant 0 : i32
    return %c0_i32, %arg1 : i32, i32
  }
  func.func @transform_2(%arg0: i32, %arg1: i32) -> (i32, i32) {
    %c0_i32 = arith.constant 0 : i32
    %c0_i32_0 = arith.constant 0 : i32
    return %arg0, %c0_i32 : i32, i32
  }
  func.func @transform_3(%arg0: i32, %arg1: i32) -> (i32, i32) {
    %c0_i32 = arith.constant 0 : i32
    %c0_i32_0 = arith.constant 0 : i32
    return %c0_i32, %arg1 : i32, i32
  }
  func.func @transform_4(%arg0: i32, %arg1: i32) -> (i32, i32) {
    %c0_i32 = arith.constant 0 : i32
    %c0_i32_0 = arith.constant 0 : i32
    return %arg0, %c0_i32 : i32, i32
  }
}

</mosaic_0001>

<bundles_post_ra>
// kernel: tpu_custom_call.1
= control target key start
LH: loop header
LB: loop body
LE: loop exit
PB: predicated region body
PF: predicated region fallthrough
CT: control target
= control target key end

     0   :  { %vm35_vm0 = vcmask 261120   ;;  %vm22_vm1 = vcmask 7168   ;;  %v191_v9 = vmov -1e+30   ;;  %v71_v10 = vlaneseq  ;;  %s253_s1 = inlined_call_operand.vmem [shape: f32[32,8], index: 1, kind: input, shape index: {}]   ;;  %s254_s0 = inlined_call_operand.vmem [shape: f32[8,32], index: 0, kind: input, shape index: {}]   ;;  %s255_s2 = inlined_call_operand.vmem [shape: s32[8,1], index: 2, kind: input, shape index: {}]   ;;  %s256_s3 = inlined_call_operand.vmem [shape: s32[1,8], index: 3, kind: input, shape index: {}]   ;;  %s257_s4 = inlined_call_operand.vmem [shape: f32[8,1], index: 4, kind: output, shape index: {}]  }
   0x1   :  { %v31_v0 = vld [vmem:[%s253_s1 + $0x10] sm:$0xff]  ;;  %v32_v1 = vld [vmem:[%s253_s1 + $0x18] sm:$0xff]  ;;  %v29_v2 = vld [vmem:[%s253_s1] sm:$0xff]  ;;  %23 = vst.msk [vmem:[#allocation2] sm:$0xff] %vm22_vm1, %v191_v9  ;;  %vm82_vm3 = vcmask 64512   ;;  %v192_v17 = vmov 0  }
   0x2   :  { %v34_v3 = vpack.c.bf16 %v32_v1, %v31_v0  ;;  %v30_v4 = vld [vmem:[%s253_s1 + $0x8] sm:$0xff]  ;;  %v26_v5 = vld [vmem:[%s254_s0] sm:$0xff]  ;;  %v72_v11 = vshrl.u32 %v71_v10, 7  ;;  %v76_v12 = vand.u32 127, %v71_v10  ;;  %178 = vset.pattern.permute.xlu0 %v192_v17  ;;  %179 = vset.pattern.permute.xlu1 %v192_v17  ;;  %v193_v18 = vmov 0.0  }
   0x3   :  { %v27_v6 = vmul.f32 3.5714285, %v26_v5  ;;  %v33_v7 = vpack.c.bf16 %v30_v4, %v29_v2  ;;  %24 = vst.msk [vmem:[#allocation3] sm:$0xff] %vm22_vm1, %v193_v18  ;;  %v52_v19 = vld [vmem:[%s255_s2] sm:$0xff] }
   0x4   :  { %45 = vmatpush.bf16.msra.mxu0 %v34_v3  ;;  %vm79_vm2 = vcmp.eq.s32.totalorder %v72_v11, %v76_v12  ;;  %25 = vst.msk [vmem:[#allocation4] sm:$0xff] %vm22_vm1, %v193_v18  ;;  %55 = vperm.xlu1 %179, %v52_v19   ;;  %v180_v27 = vld [vmem:[%s256_s3] ss:$0 sm:$0xff] }
   0x5   :  { %v28_v8 = vpack.c.bf16 %v27_v6, %v27_v6 }
   0x8   :  { %46 = vmatpush.bf16.msra.mxu0 %v33_v7  ;;  %v81_v20 = vld [vmem:[#allocation2] sm:$0xff] }
   0xa   :  { %v98_v38 = vld [vmem:[#allocation3] sm:$0xff] }
   0xb   :  { %174 = vmatmul.msk.bf16.vlgmr.msra.gmra.mxu0 %vm35_vm0, %v28_v8  ;;  %v106_v39 = vld [vmem:[#allocation4] sm:$0xff] }
  0x76   :  { %v56_v28 = vpop.permute.xlu1 %55 }
  0x77   :  { %vm58_vm4 = vcmp.eq.s32.totalorder %v56_v28, %v180_v27 }
  0x88   :  { %v48_v13 = vpop.f32.mrf.mxu0 }
  0x89   :  { %v80_v14 = vsel %vm79_vm2, -1e+30, %v48_v13 }
  0x8a   :  { %v83_v15 = vsel %vm82_vm3, %v80_v14, -inf }
  0x8b   :  { %84 = vmax.xlane.f32.xlu0 %v83_v15 }
  0x90   :  { %v50_v16 = vpop.f32.mrf.mxu0 }
  0xfe   :  { %v85_v21 = vpop.xlane.xlu0 %84 }
  0xff   :  { %v86_v22 = vmax.f32 %v81_v20, %v85_v21 }
 0x101   :  { %v87_v23 = vsub.f32 %v81_v20, %v86_v22  ;;  %114 = vst.msk [vmem:[#allocation2] sm:$0xff] %vm22_vm1, %v86_v22  ;;  %92 = vperm.xlu0 %178, %v86_v22  }
 0x103   :  { %v88_v33 = vmul.f32 1.442695, %v87_v23 }
 0x108   :  { %v155_v34 = vld [vmem:[#allocation2] sm:$0xff] }
 0x109   :  { %v158_v35 = vsub.f32 0.0, %v155_v34 }
 0x10b   :  { %v159_v37 = vmul.f32 1.442695, %v158_v35 }
 0x173   :  { %v93_v24 = vpop.permute.xlu0 %92 }
 0x174   :  { %v95_v25 = vsub.f32 %v80_v14, %v93_v24 }
 0x176   :  { %v96_v26 = vmul.f32 1.442695, %v95_v25 }
 0x178   :  { %181 = vpow2.f32 %v96_v26 }
 0x179   :  { %183 = vpow2.f32 %v88_v33 }
 0x17a   :  { %185 = vpow2.f32 %v159_v37 }
 0x17e   :  { %v182_v29 = vpop.eup %181 }
 0x17f   :  { %v100_v30 = vsel %vm82_vm3, %v182_v29, 0.0  ;;  %v108_v31 = vsel %vm58_vm4, %v182_v29, 0.0  ;;  %v184_v36 = vpop.eup %183 }
 0x180   :  { %101 = vadd.xlane.f32.xlu1 %v100_v30  ;;  %v109_v32 = vsel %vm82_vm3, %v108_v31, 0.0  ;;  %v99_v40 = vmul.f32 %v184_v36, %v98_v38  ;;  %v107_v42 = vmul.f32 %v184_v36, %v106_v39  ;;  %v186_v46 = vpop.eup %185 }
 0x181   :  { %110 = vadd.xlane.f32.xlu2 %v109_v32  ;;  %v161_v47 = vmul.f32 1e-08, %v186_v46 }
 0x1f3   :  { %v102_v41 = vpop.xlane.xlu1 %101 }
 0x1f4   :  { %v103_v43 = vadd.f32 %v102_v41, %v99_v40  ;;  %v111_v44 = vpop.xlane.xlu2 %110 }
 0x1f5   :  { %v112_v45 = vadd.f32 %v111_v44, %v107_v42 }
 0x1f6   :  { %105 = vst.msk [vmem:[#allocation3] sm:$0xff] %vm22_vm1, %v103_v43 }
 0x1f7   :  { %113 = vst.msk [vmem:[#allocation4] sm:$0xff] %vm22_vm1, %v112_v45 }
 0x1fd   :  { %v157_v48 = vld [vmem:[#allocation3] sm:$0xff] }
 0x1fe   :  { %v162_v49 = vadd.f32 %v161_v47, %v157_v48  ;;  %v156_v50 = vld [vmem:[#allocation4] sm:$0xff] }
 0x1ff   :  { %187 = vlog2.f32 %v156_v50 }
 0x200   :  { %189 = vlog2.f32 %v162_v49 }
 0x205   :  { %v188_v51 = vpop.eup %187 }
 0x206   :  { %v190_v52 = vpop.eup %189  ;;  %v166_v53 = vmul.f32 0.6931472, %v188_v51 }
 0x207   :  { %v164_v54 = vmul.f32 0.6931472, %v190_v52 }
 0x209   :  { %v167_v55 = vsub.f32 %v164_v54, %v166_v53 }
 0x20b   :  { %169 = vst.msk [vmem:[%s257_s4] sm:$0xff] %vm22_vm1, %v167_v55 }

</bundles_post_ra>
